<compile_context>
chip_gen: v5e
topology: v5e:2x2
jax: 0.10.0
libtpu: 0.0.40
codegen_flags: <defaults>
</compile_context>

<pallas_src>
import functools

import jax
import jax.numpy as jnp
from jax.experimental import pallas as pl
from jax.experimental.pallas import tpu as pltpu


def _softplus(z):
    # Numerically stable softplus using ops that lower cleanly in Mosaic.
    # exp(-|z|) is in (0, 1], so log(1 + u) is well conditioned.
    return jnp.maximum(z, 0.0) + jnp.log(1.0 + jnp.exp(-jnp.abs(z)))


def _bayes_linear_kernel(x_ref, wloc_ref, wlog_ref, epsw_ref,
                         bloc_ref, blog_ref, epsb_ref,
                         o_ref, acc_ref):
    k = pl.program_id(3)

    @pl.when(k == 0)
    def _():
        acc_ref[...] = jnp.zeros_like(acc_ref)

    # Reparameterized weight sample for this (m, k, j) tile (VPU work, fused
    # with the MXU matmul).
    w = (wloc_ref[...].astype(jnp.float32)
         + epsw_ref[...].astype(jnp.float32) * _softplus(wlog_ref[...].astype(jnp.float32)))

    acc_ref[...] += jnp.dot(x_ref[...].astype(jnp.float32), w,
                            preferred_element_type=jnp.float32)

    @pl.when(k == pl.num_programs(3) - 1)
    def _():
        b = (bloc_ref[...].astype(jnp.float32)
             + epsb_ref[...].astype(jnp.float32) * _softplus(blog_ref[...].astype(jnp.float32)))
        o_ref[...] = (acc_ref[...] + b).astype(o_ref.dtype)


def _pick_lane_tile(dim, preferred):
    # Lane (last-dim) blocks must be a multiple of 128 or the full dim.
    for t in (preferred, 512, 256, 128):
        if t <= dim and dim % t == 0:
            return t
    return dim


def _pick_sublane_tile(dim, preferred):
    # Sublane (second-to-last) blocks must be a multiple of 8 or the full dim.
    for t in (preferred, 512, 256, 128, 64, 32, 16, 8):
        if t <= dim and dim % t == 0:
            return t
    return dim


@functools.partial(jax.jit, static_argnames=("tb", "tn", "tk"))
def bayes_linear_pallas(x, w_loc, w_logscale, eps_w, b_loc, b_logscale, eps_b,
                        *, tb=256, tn=256, tk=256):
    """out[m] = x[m] @ (w_loc + eps_w[m] * softplus(w_logscale))
               + (b_loc + eps_b[m] * softplus(b_logscale))"""
    M, B, K = x.shape
    Kw, N = w_loc.shape
    assert Kw == K
    assert eps_w.shape == (M, K, N)
    assert eps_b.shape == (M, N)

    tb = _pick_sublane_tile(B, tb)
    tn = _pick_lane_tile(N, tn)
    tk = _pick_lane_tile(K, tk)

    b_loc2 = b_loc.reshape(1, N)
    b_log2 = b_logscale.reshape(1, N)
    eps_b3 = eps_b.reshape(M, 1, N)

    grid = (M, B // tb, N // tn, K // tk)

    return pl.pallas_call(
        _bayes_linear_kernel,
        out_shape=jax.ShapeDtypeStruct((M, B, N), x.dtype),
        grid_spec=pltpu.PrefetchScalarGridSpec(
            num_scalar_prefetch=0,
            grid=grid,
            in_specs=[
                pl.BlockSpec((None, tb, tk), lambda m, i, j, k: (m, i, k)),   # x
                pl.BlockSpec((tk, tn),       lambda m, i, j, k: (k, j)),      # w_loc
                pl.BlockSpec((tk, tn),       lambda m, i, j, k: (k, j)),      # w_logscale
                pl.BlockSpec((None, tk, tn), lambda m, i, j, k: (m, k, j)),   # eps_w
                pl.BlockSpec((1, tn),        lambda m, i, j, k: (0, j)),      # b_loc
                pl.BlockSpec((1, tn),        lambda m, i, j, k: (0, j)),      # b_logscale
                pl.BlockSpec((None, 1, tn),  lambda m, i, j, k: (m, 0, j)),   # eps_b
            ],
            out_specs=pl.BlockSpec((None, tb, tn), lambda m, i, j, k: (m, i, j)),
            scratch_shapes=[pltpu.VMEM((tb, tn), jnp.float32)],
        ),
        compiler_params=pltpu.CompilerParams(
            dimension_semantics=("parallel", "parallel", "parallel", "arbitrary"),
        ),
    )(x, w_loc, w_logscale, eps_w, b_loc2, b_log2, eps_b3)


def bayes_linear_forward(x, w_loc, w_logscale, b_loc, b_logscale,
                         eps_w, eps_b, prior_scale=1.0):
    """Full forward semantics of BayesLinear.forward (reparam branch):
    returns (out, kl_div, entropy)."""
    out = bayes_linear_pallas(x, w_loc, w_logscale, eps_w, b_loc, b_logscale, eps_b)

    # Side-effect bookkeeping of the PyTorch module (tiny, plain JAX):
    # KL( N(loc, softplus(logscale)) || N(0, prior_scale) ) and entropy, summed.
    sigma = _softplus(w_logscale)
    kl_div = jnp.sum(jnp.log(prior_scale / sigma)
                     + (sigma ** 2 + w_loc ** 2) / (2.0 * prior_scale ** 2) - 0.5)
    entropy = jnp.sum(0.5 + 0.5 * jnp.log(2.0 * jnp.pi) + jnp.log(sigma))
    return out, kl_div, entropy


if __name__ == "__main__":
    key = jax.random.PRNGKey(0)
    num_MC, batch, in_features, out_features = 2, 8, 32, 32
    k1, k2, k3, k4, k5 = jax.random.split(key, 5)

    mu_init_std = float(jnp.sqrt(2.0 / (in_features + out_features)))

    x = jax.random.normal(k1, (num_MC, batch, in_features), dtype=jnp.float32)
    w_loc = jax.random.normal(k2, (in_features, out_features), jnp.float32) * mu_init_std
    w_logscale = jnp.full((in_features, out_features),
                          jnp.log(jnp.expm1(mu_init_std / out_features)), jnp.float32)
    b_loc = (jax.random.uniform(k3, (out_features,), jnp.float32, -1.0, 1.0)
             / jnp.sqrt(float(in_features)))
    b_logscale = jnp.full((out_features,), jnp.log(jnp.expm1(mu_init_std)), jnp.float32)

    # Standard-normal reparameterization noise (the module's rsample eps).
    eps_w = jax.random.normal(k4, (num_MC, in_features, out_features), jnp.float32)
    eps_b = jax.random.normal(k5, (num_MC, out_features), jnp.float32)

    out, kl_div, entropy = bayes_linear_forward(
        x, w_loc, w_logscale, b_loc, b_logscale, eps_w, eps_b, prior_scale=1.0)
    out = jax.block_until_ready(out)

    # Pure-JAX reference for the forward pass.
    sampled_w = w_loc[None] + eps_w * _softplus(w_logscale)[None]
    sampled_b = b_loc[None] + eps_b * _softplus(b_logscale)[None]
    ref = jnp.einsum("mbk,mkn->mbn", x, sampled_w) + sampled_b[:, None, :]

    assert out.shape == (num_MC, batch, out_features)
    assert out.dtype == x.dtype
    assert jnp.allclose(out, ref, rtol=1e-5, atol=1e-5), "mismatch vs reference"
    assert bool(jnp.isfinite(kl_div)) and bool(jnp.isfinite(entropy))

    print("KERNEL_OK")
</pallas_src>

<mosaic_0001>
module attributes {stable_mosaic.version = 11 : i64} {
  func.func @_bayes_linear_kernel(%arg0: i32, %arg1: i32, %arg2: i32, %arg3: i32, %arg4: memref<1x8x32xf32, #tpu.memory_space<vmem>>, %arg5: memref<32x32xf32, #tpu.memory_space<vmem>>, %arg6: memref<32x32xf32, #tpu.memory_space<vmem>>, %arg7: memref<1x32x32xf32, #tpu.memory_space<vmem>>, %arg8: memref<1x32xf32, #tpu.memory_space<vmem>>, %arg9: memref<1x32xf32, #tpu.memory_space<vmem>>, %arg10: memref<1x1x32xf32, #tpu.memory_space<vmem>>, %arg11: memref<1x8x32xf32, #tpu.memory_space<vmem>>, %arg12: memref<8x32xf32, #tpu.memory_space<vmem>>) attributes {dimension_semantics = [#tpu.dimension_semantics<parallel>, #tpu.dimension_semantics<parallel>, #tpu.dimension_semantics<parallel>, #tpu.dimension_semantics<arbitrary>], iteration_bounds = array<i64: 2, 1, 1, 1>, scalar_prefetch = 0 : i64, scratch_operands = 1 : i64, tpu.core_type = #tpu.core_type<tc>, window_params = [{transform_indices = @transform_0, window_bounds = array<i64: 1, 8, 32>}, {transform_indices = @transform_1, window_bounds = array<i64: 32, 32>}, {transform_indices = @transform_2, window_bounds = array<i64: 32, 32>}, {transform_indices = @transform_3, window_bounds = array<i64: 1, 32, 32>}, {transform_indices = @transform_4, window_bounds = array<i64: 1, 32>}, {transform_indices = @transform_5, window_bounds = array<i64: 1, 32>}, {transform_indices = @transform_6, window_bounds = array<i64: 1, 1, 32>}, {transform_indices = @transform_7, window_bounds = array<i64: 1, 8, 32>}]} {
    %c0_i32 = arith.constant 0 : i32
    %0 = arith.cmpi eq, %arg3, %c0_i32 : i32
    %1 = arith.extui %0 : i1 to i32
    %c0_i32_0 = arith.constant 0 : i32
    %2 = arith.cmpi ne, %1, %c0_i32_0 : i32
    scf.if %2 {
      %cst_19 = arith.constant 0.000000e+00 : f32
      %28 = vector.broadcast %cst_19 : f32 to vector<8x32xf32>
      %c0_20 = arith.constant 0 : index
      %c0_21 = arith.constant 0 : index
      %29 = vector.load %arg12[%c0_20, %c0_21] : memref<8x32xf32, #tpu.memory_space<vmem>>, vector<8x32xf32>
      tpu.vector_store %arg12[%c0_20, %c0_21], %28 {strides = array<i32>} : memref<8x32xf32, #tpu.memory_space<vmem>>, vector<8x32xf32>,
    } else {
    }
    %c0 = arith.constant 0 : index
    %c0_1 = arith.constant 0 : index
    %3 = vector.load %arg5[%c0, %c0_1] : memref<32x32xf32, #tpu.memory_space<vmem>>, vector<32x32xf32>
    %c0_2 = arith.constant 0 : index
    %c0_3 = arith.constant 0 : index
    %c0_4 = arith.constant 0 : index
    %4 = vector.load %arg7[%c0_2, %c0_3, %c0_4] : memref<1x32x32xf32, #tpu.memory_space<vmem>>, vector<1x32x32xf32>
    %5 = vector.shape_cast %4 : vector<1x32x32xf32> to vector<32x32xf32>
    %c0_5 = arith.constant 0 : index
    %c0_6 = arith.constant 0 : index
    %6 = vector.load %arg6[%c0_5, %c0_6] : memref<32x32xf32, #tpu.memory_space<vmem>>, vector<32x32xf32>
    %cst = arith.constant 0.000000e+00 : f32
    %7 = vector.broadcast %cst : f32 to vector<32x32xf32>
    %8 = arith.maximumf %6, %7 : vector<32x32xf32>
    %9 = math.absf %6 : vector<32x32xf32>
    %cst_7 = arith.constant 0.000000e+00 : f32
    %10 = vector.broadcast %cst_7 : f32 to vector<32x32xf32>
    %11 = arith.subf %10, %9 : vector<32x32xf32>
    %12 = math.exp %11 : vector<32x32xf32>
    %cst_8 = arith.constant 1.000000e+00 : f32
    %13 = vector.broadcast %cst_8 : f32 to vector<32x32xf32>
    %14 = arith.addf %13, %12 : vector<32x32xf32>
    %15 = math.log %14 : vector<32x32xf32>
    %16 = arith.addf %8, %15 : vector<32x32xf32>
    %17 = arith.mulf %5, %16 : vector<32x32xf32>
    %18 = arith.addf %3, %17 : vector<32x32xf32>
    %c0_9 = arith.constant 0 : index
    %c0_10 = arith.constant 0 : index
    %19 = vector.load %arg12[%c0_9, %c0_10] : memref<8x32xf32, #tpu.memory_space<vmem>>, vector<8x32xf32>
    %c0_11 = arith.constant 0 : index
    %c0_12 = arith.constant 0 : index
    %c0_13 = arith.constant 0 : index
    %20 = vector.load %arg4[%c0_11, %c0_12, %c0_13] : memref<1x8x32xf32, #tpu.memory_space<vmem>>, vector<1x8x32xf32>
    %21 = vector.shape_cast %20 : vector<1x8x32xf32> to vector<8x32xf32>
    %cst_14 = arith.constant dense<0.000000e+00> : vector<8x32xf32>
    %22 = tpu.matmul %21, %18, %cst_14 {dimension_numbers = #tpu.dot_dimension_numbers<[1], [0], [0], [1], [0, 0, 1, 1], [], []>} : vector<8x32xf32>, vector<32x32xf32>, vector<8x32xf32> -> vector<8x32xf32>
    %23 = arith.addf %19, %22 : vector<8x32xf32>
    %c0_15 = arith.constant 0 : index
    %c0_16 = arith.constant 0 : index
    %24 = vector.load %arg12[%c0_15, %c0_16] : memref<8x32xf32, #tpu.memory_space<vmem>>, vector<8x32xf32>
    tpu.vector_store %arg12[%c0_15, %c0_16], %23 {strides = array<i32>} : memref<8x32xf32, #tpu.memory_space<vmem>>, vector<8x32xf32>,
    %c0_i32_17 = arith.constant 0 : i32
    %25 = arith.cmpi eq, %arg3, %c0_i32_17 : i32
    %26 = arith.extui %25 : i1 to i32
    %c0_i32_18 = arith.constant 0 : i32
    %27 = arith.cmpi ne, %26, %c0_i32_18 : i32
    scf.if %27 {
      %c0_19 = arith.constant 0 : index
      %c0_20 = arith.constant 0 : index
      %28 = vector.load %arg8[%c0_19, %c0_20] : memref<1x32xf32, #tpu.memory_space<vmem>>, vector<1x32xf32>
      %c0_21 = arith.constant 0 : index
      %c0_22 = arith.constant 0 : index
      %c0_23 = arith.constant 0 : index
      %29 = vector.load %arg10[%c0_21, %c0_22, %c0_23] : memref<1x1x32xf32, #tpu.memory_space<vmem>>, vector<1x1x32xf32>
      %30 = vector.shape_cast %29 : vector<1x1x32xf32> to vector<1x32xf32>
      %c0_24 = arith.constant 0 : index
      %c0_25 = arith.constant 0 : index
      %31 = vector.load %arg9[%c0_24, %c0_25] : memref<1x32xf32, #tpu.memory_space<vmem>>, vector<1x32xf32>
      %cst_26 = arith.constant 0.000000e+00 : f32
      %32 = vector.broadcast %cst_26 : f32 to vector<1x32xf32>
      %33 = arith.maximumf %31, %32 : vector<1x32xf32>
      %34 = math.absf %31 : vector<1x32xf32>
      %cst_27 = arith.constant 0.000000e+00 : f32
      %35 = vector.broadcast %cst_27 : f32 to vector<1x32xf32>
      %36 = arith.subf %35, %34 : vector<1x32xf32>
      %37 = math.exp %36 : vector<1x32xf32>
      %cst_28 = arith.constant 1.000000e+00 : f32
      %38 = vector.broadcast %cst_28 : f32 to vector<1x32xf32>
      %39 = arith.addf %38, %37 : vector<1x32xf32>
      %40 = math.log %39 : vector<1x32xf32>
      %41 = arith.addf %33, %40 : vector<1x32xf32>
      %42 = arith.mulf %30, %41 : vector<1x32xf32>
      %43 = arith.addf %28, %42 : vector<1x32xf32>
      %c0_29 = arith.constant 0 : index
      %c0_30 = arith.constant 0 : index
      %44 = vector.load %arg12[%c0_29, %c0_30] : memref<8x32xf32, #tpu.memory_space<vmem>>, vector<8x32xf32>
      %45 = vector.broadcast %43 : vector<1x32xf32> to vector<8x32xf32>
      %46 = arith.addf %44, %45 : vector<8x32xf32>
      %c0_31 = arith.constant 0 : index
      %c0_32 = arith.constant 0 : index
      %c0_33 = arith.constant 0 : index
      %47 = vector.load %arg11[%c0_31, %c0_32, %c0_33] : memref<1x8x32xf32, #tpu.memory_space<vmem>>, vector<1x8x32xf32>
      %48 = vector.shape_cast %47 : vector<1x8x32xf32> to vector<8x32xf32>
      %49 = vector.shape_cast %46 : vector<8x32xf32> to vector<1x8x32xf32>
      tpu.vector_store %arg11[%c0_31, %c0_32, %c0_33], %49 {strides = array<i32>} : memref<1x8x32xf32, #tpu.memory_space<vmem>>, vector<1x8x32xf32>,
    } else {
    }
    return
  }
  func.func @transform_0(%arg0: i32, %arg1: i32, %arg2: i32, %arg3: i32) -> (i32, i32, i32) {
    %c0_i32 = arith.constant 0 : i32
    return %arg0, %arg1, %arg3 : i32, i32, i32
  }
  func.func @transform_1(%arg0: i32, %arg1: i32, %arg2: i32, %arg3: i32) -> (i32, i32) {
    %c0_i32 = arith.constant 0 : i32
    return %arg3, %arg2 : i32, i32
  }
  func.func @transform_2(%arg0: i32, %arg1: i32, %arg2: i32, %arg3: i32) -> (i32, i32) {
    %c0_i32 = arith.constant 0 : i32
    return %arg3, %arg2 : i32, i32
  }
  func.func @transform_3(%arg0: i32, %arg1: i32, %arg2: i32, %arg3: i32) -> (i32, i32, i32) {
    %c0_i32 = arith.constant 0 : i32
    return %arg0, %arg3, %arg2 : i32, i32, i32
  }
  func.func @transform_4(%arg0: i32, %arg1: i32, %arg2: i32, %arg3: i32) -> (i32, i32) {
    %c0_i32 = arith.constant 0 : i32
    %c0_i32_0 = arith.constant 0 : i32
    return %c0_i32, %arg2 : i32, i32
  }
  func.func @transform_5(%arg0: i32, %arg1: i32, %arg2: i32, %arg3: i32) -> (i32, i32) {
    %c0_i32 = arith.constant 0 : i32
    %c0_i32_0 = arith.constant 0 : i32
    return %c0_i32, %arg2 : i32, i32
  }
  func.func @transform_6(%arg0: i32, %arg1: i32, %arg2: i32, %arg3: i32) -> (i32, i32, i32) {
    %c0_i32 = arith.constant 0 : i32
    %c0_i32_0 = arith.constant 0 : i32
    return %arg0, %c0_i32, %arg2 : i32, i32, i32
  }
  func.func @transform_7(%arg0: i32, %arg1: i32, %arg2: i32, %arg3: i32) -> (i32, i32, i32) {
    %c0_i32 = arith.constant 0 : i32
    return %arg0, %arg1, %arg2 : i32, i32, i32
  }
}

</mosaic_0001>

<bundles_post_ra>
// kernel: bayes_linear_pallas.1
= control target key start
LH: loop header
LB: loop body
LE: loop exit
PB: predicated region body
PF: predicated region fallthrough
CT: control target
= control target key end

     0   :  { %s1391_s0 = inlined_call_operand.hbm [shape: f32[2,8,32], index: 0, kind: input, shape index: {}]   ;;  %s1392_s1 = inlined_call_operand.hbm [shape: f32[32,32], index: 1, kind: input, shape index: {}]   ;;  %s1393_s2 = inlined_call_operand.hbm [shape: f32[32,32], index: 2, kind: input, shape index: {}]   ;;  %s1394_s3 = inlined_call_operand.hbm [shape: f32[2,32,32], index: 3, kind: input, shape index: {}]   ;;  %s1395_s4 = inlined_call_operand.vmem [shape: f32[1,32], index: 4, kind: input, shape index: {}]   ;;  %s1396_s5 = inlined_call_operand.vmem [shape: f32[1,32], index: 5, kind: input, shape index: {}]   ;;  %s1397_s6 = inlined_call_operand.vmem [shape: f32[2,1,32], index: 6, kind: input, shape index: {}]   ;;  %s1398_s7 = inlined_call_operand.hbm [shape: f32[2,8,32], index: 7, kind: output, shape index: {}]  }
   0x1   :  { %1409 = sst [smem:[#allocation23_spill]] %s1392_s1 }
   0x2   :  { %1410 = sst [smem:[#allocation24_spill]] %s1393_s2 }
   0x3   :  { %12 = vsyncpa [#allocation4], 0 }
   0x4   :  { %14 = vsyncpa [#allocation4 + $0x1], 0 }
   0x5   :  { %15 = vsyncpa [#allocation7], 0 }
   0x6   :  { %16 = vsyncpa [#allocation10], 0 }
   0x7   :  { %18 = vsyncpa [#allocation10 + $0x1], 0 }
   0x8   :  { %19 = vsyncpa [#allocation5], 0 }
   0x9   :  { %21 = vsyncpa [#allocation5 + $0x1], 0  ;;  %s1194_s24 = smov 0   ;;  %s1196_s25 = smov 0  }
   0xa   :  { %s1198_s26 = smov 0   ;;  %s1200_s27 = smov 0  }
   0xb   :  { %s1202_s28 = smov 0   ;;  %s1204_s29 = smov 0  }
   0xc LB: > { %1411 = sst [smem:[#allocation16_spill]] %s1127_s24  ;;  %s801_s30 = sadd.s32 4294967295, %s1147_s29   ;;  %s1147_s29 = sphi %s1204_s29, %s27_s29   ;;  %s1143_s28 = sphi %s1202_s28, %s1438_s28   ;;  %s1139_s27 = sphi %s1200_s27, %s1437_s27   ;;  %s1135_s26 = sphi %s1198_s26, %s1433_s26   ;;  %s1131_s25 = sphi %s1196_s25, %s1436_s25   ;;  %s1127_s24 = sphi %s1194_s24, %s1435_s24  }
   0xd   : > { %1412 = sst [smem:[#allocation17_spill]] %s1135_s26  ;;  %p803_p0 = scmp.ge.s32.totalorder %s1147_s29, 1 }
   0xe   : > { %1413 = sst [smem:[#allocation18_spill]] %s1147_s29  ;;  %p1228_p1 = scmp.eq.s32.totalorder %s801_s30, 0 }
   0xf   : > { %p284_p2 = scmp.lt.s32.totalorder %s1147_s29, 3  ;;  %s1415_s1 = sld [smem:[#allocation23_spill]] }
  0x10   : > { %s1149_s13 = smov [#allocation6]   ;;  %p808_p6 = scmp.ge.s32.totalorder %s1147_s29, 2 }
  0x11   : > { %p1236_p3 = pnand %p803_p0, %p284_p2  ;;  %s301_s14 = sshll.u32 %s1149_s13, 4  ;;  %s302_s14 = int_to_ptr.vmem [resolvable:$true] %s301_s14 }
  0x12   : > { %s1417_s2 = sld [smem:[#allocation24_spill]]  ;;  %s1399_s18 = smov 128  }
  0x13   : > { %p840_p4 = pneg %p1236_p3  ;;  %s1400_s19 = smov 8  }
  0x14   : > { %s1152_s20 = smov [#allocation8]   ;;  %s802_s22 = sadd.s32 4294967294, %s1147_s29  }
  0x15   : > { %s299_s11 = sshll.u32 %s1415_s1, 4  ;;  %p841_p5 = pnand %p840_p4, %p1228_p1  ;;  %s300_s11 = int_to_ptr.hbm [resolvable:$true] %s299_s11 }
  0x16   : > { %s319_s21 = sshll.u32 %s1152_s20, 4  ;;  %s53_s23 = sadd.s32 1, %s1143_s28  ;;  %s320_s21 = int_to_ptr.vmem [resolvable:$true] %s319_s21 }
  0x17   : > { %843 = dma.hbm_to_vmem [thread:$0]  (!%p841_p5), %s300_s11, 512, %s302_s14, [#allocation7], %s1399_s18, %s1399_s18, %s1400_s19  }
  0x18   : > { %s317_s17 = sshll.u32 %s1417_s2, 4  ;;  %p55_p7 = scmp.ge.s32.totalorder %s53_s23, 2  ;;  %s318_s17 = int_to_ptr.hbm [resolvable:$true] %s317_s17 }
  0x19   : > { %846 = dma.hbm_to_vmem [thread:$0]  (!%p841_p5), %s318_s17, 512, %s320_s21, [#allocation7], %s1399_s18, %s1399_s18, %s1400_s19  }
  0x1a   : > { %s64_s9 = sadd.s32 1, %s1135_s26  ;;  %p71_p8 = scmp.ne.s32.totalorder %s1135_s26, %s1131_s25 }
  0x1b   : > { %p72_p9 = scmp.eq.s32.totalorder %s1147_s29, 0  ;;  %s1440_s23 = smov (%p55_p7, %s53_s23), 0 }
  0x1c   : > { %1418 = sst [smem:[#allocation19_spill]] %s1440_s23  ;;  %p77_p11 = scmp.ne.s32.totalorder %s1131_s25, %s1127_s24 }
  0x1d   : > { %p1262_p10 = por %p72_p9, %p71_p8  ;;  %s57_s11 = ssub.s32 %s1143_s28, %s1440_s23 }
  0x1e   : > { %p271_p12 = scmp.eq.s32.totalorder %s801_s30, 1  ;;  %p62_p13 = scmp.eq.s32.totalorder %s57_s11, 0 }
  0x1f   : > { %p1274_p0 = por %p1228_p1, %p77_p11  ;;  %p277_p4 = scmp.eq.s32.totalorder %s802_s22, 1 }
  0x20   : > { %p1278_p2 = por %p271_p12, %p71_p8  ;;  %p860_p7 = scmp.lt.s32.totalorder %s1147_s29, 2 }
  0x21   : > { %s1283_s15 = scalar_select %p62_p13, %s1135_s26, %s64_s9  }
  0x22   : > { %s1421_s14 = scalar_select %p1278_p2, 1, 0 }
  0x23   : > { %1423 = sst [smem:[#allocation21_spill]] %s1283_s15  ;;  %p1285_p5 = por %p277_p4, %p77_p11 }
  0x24   : > { %1422 = sst [smem:[#allocation20_spill]] %s1421_s14  ;;  %s345_s30 = sand.u32 1, %s1135_s26  }
  0x25   : > { %s1424_s16 = scalar_select %p1285_p5, 1, 0 }
  0x26   : > { %s810_s17 = sshll.u32 %s1143_s28, 3  ;;  %s809_s20 = sshll.u32 %s345_s30, 3 }
  0x27   : > { %1425 = sst [smem:[#allocation22_spill]] %s1424_s16  ;;  %s355_s18 = scalar_lea.hbm %s1391_s0, %s810_s17 }
  0x28   : > { %s357_s19 = sshll.u32 %s355_s18, 4  ;;  %s349_s1 = scalar_lea.vmem [#allocation3], %s809_s20  ;;  %s358_s19 = int_to_ptr.hbm [resolvable:$true] %s357_s19 }
  0x29   : > { %s359_s2 = sshll.u32 %s349_s1, 4  ;;  %p848_p8 = pnand %p860_p7, %p1262_p10  ;;  %s360_s2 = int_to_ptr.vmem [resolvable:$true] %s359_s2 }
  0x2a   : > { %s811_s22 = sshll.u32 %s345_s30, 5  ;;  %s825_s9 = sshll.u32 %s1143_s28, 5 }
  0x2b   : > { %s346_s23 = scalar_lea.sflag [#allocation4], %s345_s30  ;;  %s378_s26 = scalar_lea.hbm %s1394_s3, %s825_s9 }
  0x2c   : > { %850 = dma.hbm_to_vmem [thread:$0]  (!%p848_p8), %s358_s19, 128, %s360_s2, %s346_s23  }
  0x2d   : > { %s370_s16 = scalar_lea.vmem [#allocation9], %s811_s22  ;;  %s379_s14 = sshll.u32 %s378_s26, 4  ;;  %s380_s14 = int_to_ptr.hbm [resolvable:$true] %s379_s14 }
  0x2e   : > { %s381_s24 = sshll.u32 %s370_s16, 4  ;;  %s367_s18 = scalar_lea.sflag [#allocation10], %s345_s30  ;;  %s382_s24 = int_to_ptr.vmem [resolvable:$true] %s381_s24 }
  0x2f   : > { %s1426_s17 = smov 8   ;;  %s1427_s1 = smov 128  }
  0x30   : > { %853 = dma.hbm_to_vmem [thread:$0]  (!%p848_p8), %s380_s14, 512, %s382_s24, %s367_s18, %s1427_s1, %s1427_s1, %s1426_s17  }
  0x31   : > { %402 = sbr.rel (%p1236_p3) target bundleno = 239 (0xef), region = 48  ;;  %s1307_s2 = sand.u32 (!%p1236_p3), 1, %s1131_s25  }
  0x32   : > { %s815_s29 = sshll.u32 (!%p1236_p3), %s1307_s2, 3  ;;  %s405_s19 = scalar_lea.sflag (!%p1236_p3), [#allocation4], %s1307_s2 }
  0x33   : > { %s1313_s26 = scalar_lea.vmem (!%p1236_p3), [#allocation3], %s815_s29 }
  0x36   : > { %1110 = dma.done.wait (%p1274_p0), %s405_s19, 128  }
  0x37   : > { %1112 = vsyncadd (%p1274_p0), %s405_s19, 4294967168 }
  0x38   : > { %1114 = dma.done.wait (%p1228_p1), [#allocation7], 1024  }
  0x39   : > { %1116 = vsyncadd (%p1228_p1), [#allocation7], 4294966272  ;;  %s818_s24 = sshll.u32 %s1307_s2, 5  ;;  %s425_s12 = scalar_lea.sflag [#allocation10], %s1307_s2 }
  0x3a   : > { %s1325_s23 = scalar_lea.vmem [#allocation9], %s818_s24 }
  0x3b   : > { %1118 = dma.done.wait (%p1274_p0), %s425_s12, 512  }
  0x3c   : > { %1120 = vsyncadd (%p1274_p0), %s425_s12, 4294966784  ;;  %v509_v0 = vld [vmem:[#allocation8 + $0x18] sm:$0xff]  ;;  %v508_v2 = vld [vmem:[#allocation8 + $0x10] sm:$0xff]  ;;  %vm496_vm0 = vcmask 261120   ;;  %v1153_v15 = vmov 0.0   ;;  %p486_p1 = scmp.lt.s32.totalorder %s1139_s27, 1 }
  0x3d   : > { %v517_v1 = vand.u32 2147483647, %v509_v0  ;;  %v516_v3 = vand.u32 2147483647, %v508_v2  ;;  %v507_v4 = vld [vmem:[#allocation8 + $0x8] sm:$0xff]  ;;  %v506_v8 = vld [vmem:[#allocation8] sm:$0xff] }
  0x3e   : > { %v515_v6 = vand.u32 2147483647, %v507_v4  ;;  %v514_v11 = vand.u32 2147483647, %v506_v8  ;;  %497 = vst.msk [vmem:[#allocation2] sm:$0xff] %vm496_vm0, %v1153_v15  ;;  %v513_v25 = vmax.f32 %v509_v0, 0.0 }
  0x3f   : > { %v521_v5 = vsub.f32 0.0, %v517_v1  ;;  %v520_v7 = vsub.f32 0.0, %v516_v3  ;;  %v512_v27 = vmax.f32 %v508_v2, 0.0  ;;  %v511_v30 = vmax.f32 %v507_v4, 0.0  ;;  %v505_v32 = vld [vmem:[%s1325_s23 + $0x18] sm:$0xff]  ;;  %v504_v35 = vld [vmem:[%s1325_s23 + $0x10] sm:$0xff] }
  0x40   : > { %v519_v10 = vsub.f32 0.0, %v515_v6  ;;  %v518_v14 = vsub.f32 0.0, %v514_v11  ;;  %v510_v37 = vmax.f32 %v506_v8, 0.0  ;;  %v501_v39 = vld [vmem:[#allocation6 + $0x18] sm:$0xff]  ;;  %v503_v41 = vld [vmem:[%s1325_s23 + $0x8] sm:$0xff]  ;;  %v500_v43 = vld [vmem:[#allocation6 + $0x10] sm:$0xff] }
  0x41   : > { %v528_v9 = vmul.f32 1.442695, %v521_v5  ;;  %v526_v12 = vmul.f32 1.442695, %v520_v7  ;;  %v499_v47 = vld [vmem:[#allocation6 + $0x8] sm:$0xff]  ;;  %v502_v48 = vld [vmem:[%s1325_s23] sm:$0xff] }
  0x42   : > { %v524_v13 = vmul.f32 1.442695, %v519_v10  ;;  %v522_v16 = vmul.f32 1.442695, %v518_v14  ;;  %v498_v53 = vld [vmem:[#allocation6] sm:$0xff]  ;;  %v555_v57 = vld [vmem:[%s1313_s26] sm:$0xff] }
  0x43   : > { %917 = vpow2.f32 %v528_v9  ;;  %v587_v58 = vld [vmem:[%s1396_s5] sm:$0x1]  ;;  %s487_s13 = scalar_select %p486_p1, %s1139_s27, 1 }
  0x44   : > { %919 = vpow2.f32 %v526_v12  ;;  %v589_v59 = vand.u32 2147483647, %v587_v58  ;;  %v588_v1 = vmax.f32 %v587_v58, 0.0  ;;  %v585_v8 = vld [vmem:[%s1395_s4] sm:$0x1]  ;;  %s822_s21 = sshll.u32 %s1139_s27, 3 }
  0x45   : > { %921 = vpow2.f32 %v524_v13  ;;  %s491_s16 = scalar_lea.vmem %s1397_s6, %s487_s13  ;;  %v554_v5 = vld [vmem:[#allocation2] sm:$0xff]  ;;  %s618_s18 = scalar_lea.hbm %s1398_s7, %s822_s21 }
  0x46   : > { %923 = vpow2.f32 %v522_v16  ;;  %v590_v60 = vsub.f32 0.0, %v589_v59  ;;  %v586_v4 = vld [vmem:[%s491_s16] sm:$0x1]  ;;  %s476_s17 = scalar_lea.vmem [#allocation11], %s815_s29  ;;  %s622_s19 = sshll.u32 %s618_s18, 4  ;;  %s623_s19 = int_to_ptr.hbm [resolvable:$true] %s622_s19 }
  0x47   : > { %s620_s1 = sshll.u32 %s476_s17, 4  ;;  %s606_s27 = scalar_lea.sflag [#allocation5], %s1307_s2  ;;  %s621_s1 = int_to_ptr.vmem [resolvable:$true] %s620_s1 }
  0x48   : > { %v591_v61 = vmul.f32 1.442695, %v590_v60  ;;  %s1071_s26 = sshra.s32 %s623_s19, 4  ;;  %s1077_s29 = scalar_lea.hbm %s1398_s7, 16  ;;  %s1072_s26 = int_to_ptr.hbm [resolvable:$true] %s1071_s26 }
  0x49   : > { %v918_v17 = vpop.eup %917  ;;  %s1073_s24 = scalar_lea.hbm %s1072_s26, 8  ;;  %p1078_p11 = scmp.lt.s32.totalorder %s1072_s26, %s1398_s7 }
  0x4a   : > { %v920_v18 = vpop.eup %919  ;;  %v533_v19 = vadd.f32 1.0, %v918_v17  ;;  %p1074_p3 = scmp.ne.s32.totalorder %s1072_s26, %s1073_s24  ;;  %p1079_p12 = scmp.lt.s32.totalorder %s1077_s29, %s1073_s24 }
  0x4b   : > { %v922_v20 = vpop.eup %921  ;;  %v532_v21 = vadd.f32 1.0, %v920_v18 }
  0x4c   : > { %925 = vlog2.f32 %v533_v19  ;;  %v531_v22 = vadd.f32 1.0, %v922_v20  ;;  %v924_v23 = vpop.eup %923  ;;  %p1075_p9 = pnand %p1074_p3, %p1278_p2  ;;  %p1080_p13 = por %p1079_p12, %p1078_p11 }
  0x4d   : > { %927 = vlog2.f32 %v532_v21  ;;  %v530_v24 = vadd.f32 1.0, %v924_v23 }
  0x4e   : > { %929 = vlog2.f32 %v531_v22  ;;  %p1076_p10 = pneg %p1075_p9 }
  0x4f   : > { %931 = vlog2.f32 %v530_v24 }
  0x50   : > { %933 = vpow2.f32 %v591_v61  ;;  %p1081_p0 = pnand %p1080_p13, %p1076_p10 }
  0x52   : > { %v926_v26 = vpop.eup %925 }
  0x53   : > { %v928_v28 = vpop.eup %927  ;;  %v541_v29 = vmul.f32 0.6931472, %v926_v26 }
  0x54   : > { %v930_v31 = vpop.eup %929  ;;  %v539_v33 = vmul.f32 0.6931472, %v928_v28 }
  0x55   : > { %v545_v34 = vadd.f32 %v541_v29, %v513_v25  ;;  %v537_v36 = vmul.f32 0.6931472, %v930_v31  ;;  %v932_v38 = vpop.eup %931 }
  0x56   : > { %v544_v40 = vadd.f32 %v539_v33, %v512_v27  ;;  %v535_v45 = vmul.f32 0.6931472, %v932_v38  ;;  %v934_v62 = vpop.eup %933 }
  0x57   : > { %v549_v42 = vmul.f32 %v545_v34, %v505_v32  ;;  %v543_v44 = vadd.f32 %v537_v36, %v511_v30  ;;  %v593_v63 = vadd.f32 1.0, %v934_v62 }
  0x58   : > { %v548_v46 = vmul.f32 %v544_v40, %v504_v35  ;;  %v542_v51 = vadd.f32 %v535_v45, %v510_v37 }
  0x59   : > { %v553_v49 = vadd.f32 %v549_v42, %v501_v39  ;;  %v547_v50 = vmul.f32 %v543_v44, %v503_v41  ;;  %935 = vlog2.f32 %v593_v63 }
  0x5a   : > { %v552_v52 = vadd.f32 %v548_v46, %v500_v43  ;;  %v546_v55 = vmul.f32 %v542_v51, %v502_v48 }
  0x5b   : > { %572 = vmatpush.msra.mxu0 %v553_v49  ;;  %v551_v54 = vadd.f32 %v547_v50, %v499_v47 }
  0x5c   : > { %v550_v56 = vadd.f32 %v546_v55, %v498_v53 }
  0x5d   : > { %573 = vmatpush.msra.mxu0 %v552_v52 }
  0x5f   : > { %574 = vmatpush.msra.mxu0 %v551_v54  ;;  %v936_v0 = vpop.eup %935 }
  0x60   : > { %v595_v2 = vmul.f32 0.6931472, %v936_v0 }
  0x61   : > { %575 = vmatpush.msra.mxu0 %v550_v56 }
  0x62   : > { %820 = vmatmul.msk.f32.vlgmr.msra.gmra.mxu0 %vm496_vm0, %v555_v57  ;;  %v596_v3 = vadd.f32 %v595_v2, %v588_v1 }
  0x64   : > { %v597_v6 = vmul.f32 %v596_v3, %v586_v4 }
  0x66   : > { %v598_v10 = vadd.f32 %v597_v6, %v585_v8 }
  0x68   : > { %v601_v11 = vperm.slane %v598_v10, 0 }
  0xdf   : > { %v577_v7 = vpop.f32.mrf.mxu0 }
  0xe0   : > { %v580_v9 = vadd.f32 %v577_v7, %v554_v5 }
  0xe2   : > { %581 = vst.msk [vmem:[#allocation2] sm:$0xff] %vm496_vm0, %v580_v9 }
  0xe9   : > { %v599_v12 = vld [vmem:[#allocation2] sm:$0xff] }
  0xea   : > { %v603_v13 = vadd.f32 %v601_v11, %v599_v12 }
  0xec   : > { %604 = vst.msk [vmem:[%s476_s17] sm:$0xff] %vm496_vm0, %v603_v13 }
  0xed   : > { %1084 = shalt.err (!%p1081_p0)
}
  0xee   : > { %838 = dma.vmem_to_hbm [thread:$0]  (%p1278_p2), %s621_s1, 128, %s623_s19, %s606_s27  }
  0xef PF: > { %s1429_s2 = sld [smem:[#allocation16_spill]]  ;;  %p855_p4 = pnand %p808_p6, %p1285_p5 }
  0xf0   : > { %s1431_s14 = sld [smem:[#allocation18_spill]] }
  0xf1   : > { %p856_p7 = pneg %p855_p4 }
  0xf5   : > { %s634_s15 = sand.u32 1, %s1429_s2  }
  0xf6   : > { %s635_s16 = scalar_lea.sflag [#allocation5], %s634_s15 }
  0xf7   : > { %1122 = dma.done.wait (%p856_p7), %s635_s16, 128  }
  0xf8   : > { %1124 = vsyncadd (%p856_p7), %s635_s16, 4294967168  ;;  %s27_s29 = sadd.s32 1, %s1431_s14   ;;  %s1432_s30 = sld [smem:[#allocation17_spill]] }
  0xf9   : > { %p24_p8 = scmp.ge.s32.totalorder %s27_s29, 4   ;;  %s1433_s26 = sld [smem:[#allocation21_spill]] }
  0xfa   : > { %s1434_s20 = sld [smem:[#allocation19_spill]]  ;;  %s1435_s24 = smov %s1131_s25 }
  0xfb   : > { %s1437_s27 = smov %s1143_s28 }
  0xfc   :  { %26 = sbr.rel (!%p24_p8) target bundleno = 12 (0xc), region = 133 }
  0xfe   : > { %s1436_s25 = smov %s1432_s30 }
 0x100   : > { %s1438_s28 = smov %s1434_s20 }
 0x101   :  { %641 = vsyncpa [#allocation4], 1 }
 0x102   :  { %643 = vsyncpa [#allocation4 + $0x1], 1 }
 0x103   :  { %644 = vsyncpa [#allocation7], 1 }
 0x104   :  { %645 = vsyncpa [#allocation10], 1 }
 0x105   :  { %647 = vsyncpa [#allocation10 + $0x1], 1 }
 0x106   :  { %648 = vsyncpa [#allocation5], 1 }
 0x107   :  { %650 = vsyncpa [#allocation5 + $0x1], 1 }

</bundles_post_ra>
